<compile_context>
chip_gen: v5e
topology: v5e:2x2
jax: 0.10.0
libtpu: 0.0.40
codegen_flags: <defaults>
</compile_context>

<pallas_src>
import functools

import jax
import jax.numpy as jnp
from jax.experimental import pallas as pl
from jax.experimental.pallas import tpu as pltpu


def _ggnn_flatsum_kernel(num_layers, H,
                         xh_ref,     # [N, H]  f32 : x zero-padded to hidden width (also h0)
                         adj_ref,    # [N, N]  bf16: dense adjacency, A[dst, src] = #edges
                         pool_ref,   # [B, N]  f32 : one-hot graph-membership matrix
                         wg_ref,     # [L, 2H, 4H] bf16: packed per-layer gate weight
                         b4_ref,     # [1, 4H] f32 : packed biases [br | bz | bni | bnh]
                         whx_ref,    # [1, H]  f32 : head weight for x (zero-padded past I)
                         whh_ref,    # [1, H]  f32 : head weight for h
                         bpool_ref,  # [B, 1]  f32 : per-graph head bias * node count
                         out_ref,    # [B, 1]  f32
                         cat_ref):   # [N, 2H] f32 scratch: [A@h | h] staging for fused matmul
    """Whole forward pass for one (small) batch of graphs, single grid step."""
    x = xh_ref[...]                        # [N, H]  original (padded) features == h0
    A = adj_ref[...]                       # [N, N]  bf16
    b4 = b4_ref[...]                       # [1, 4H]
    h = x

    # GatedGraphConv: num_layers steps of (propagate -> GRUCell). The per-layer linear
    # W[l] is pre-folded into the GRU input weights; all gate weights are packed into a
    # single [2H, 4H] block so each layer issues exactly 2 MXU pushes (A@h and gates).
    # NOTE: Python-unrolled loop is fine at small L; switch to lax.fori_loop with
    # dynamic wg_ref[l] indexing if num_layers grows (vreg live-range pressure).
    for l in range(num_layers):
        hb = h.astype(jnp.bfloat16)
        # dominant matmul: scatter-add message passing (bf16 MXU, f32 accumulate)
        Ah = jnp.dot(A, hb, preferred_element_type=jnp.float32)            # [N, H] f32

        # Stage [A@h | h] into the scratch (two masked lane stores), then one fused
        # gate matmul: [N, 2H] @ [2H, 4H] -> [N, 4H] (== one 128-lane tile at H=32).
        cat_ref[:, 0:H] = Ah
        cat_ref[:, H:2 * H] = h
        lhs = cat_ref[...].astype(jnp.bfloat16)                            # [N, 2H] bf16
        G = jnp.dot(lhs, wg_ref[l], preferred_element_type=jnp.float32) + b4   # [N, 4H]

        # gates (torch GRUCell order r, z, n); elementwise math stays f32
        r = jax.nn.sigmoid(G[:, 0:H])
        z = jax.nn.sigmoid(G[:, H:2 * H])
        n = jnp.tanh(G[:, 2 * H:3 * H] + r * G[:, 3 * H:4 * H])
        h = (1.0 - z) * n + z * h

    # Fused head + global_add_pool (no [N,1] score tensor):
    #   pool @ (x @ wx + h @ wh + b) == (pool @ x) @ wx + (pool @ h) @ wh + counts * b
    # The final [H]-contractions are VPU multiply + lane reduction (no 1-lane MXU tiles).
    P = pool_ref[...]                                                      # [B, N] f32
    px = jnp.dot(P, x, preferred_element_type=jnp.float32)                 # [B, H]
    ph = jnp.dot(P, h, preferred_element_type=jnp.float32)                 # [B, H]
    pooled = (jnp.sum(px * whx_ref[...] + ph * whh_ref[...], axis=-1, keepdims=True)
              + bpool_ref[...])                                            # [B, 1]
    out_ref[...] = jax.nn.sigmoid(pooled)


def ggnn_flat_sum(x, adj, pool, params, num_layers):
    """Wrapper: does the algebraic refactoring (weight folding, gate packing, head/pool
    fusion, bf16 casts) once in XLA, then calls the Pallas kernel."""
    N, I = x.shape
    H = params["w"].shape[-1]
    L = num_layers
    B = pool.shape[0]

    # Single padded node tensor: serves as both h0 and the x-part of the head input.
    xh = jnp.pad(x, ((0, 0), (0, H - I)))                                  # [N, H]

    # Fold per-layer propagation weight into the GRU input weight:
    #   (A @ h @ W[l]) @ Wih_t == (A @ h) @ (W[l] @ Wih_t)
    wf = jnp.einsum("lij,jk->lik", params["w"], params["wih_t"])           # [L, H, 3H] (r,z,n)
    wh = params["whh_t"]                                                   # [H, 3H]    (r,z,n)

    wf_r, wf_z, wf_n = wf[..., 0:H], wf[..., H:2 * H], wf[..., 2 * H:3 * H]
    wh_r, wh_z, wh_n = wh[:, 0:H], wh[:, H:2 * H], wh[:, 2 * H:3 * H]

    # Packed gate weight Wg[l] in bf16:
    #   rows 0:H   (A@h side): [Wf_r | Wf_z | Wf_n |  0  ]
    #   rows H:2H  (h    side): [Wh_r | Wh_z |  0   | Wh_n]
    top = jnp.concatenate([wf_r, wf_z, wf_n, jnp.zeros((L, H, H), jnp.float32)], axis=-1)
    bot = jnp.concatenate([wh_r, wh_z, jnp.zeros((H, H), jnp.float32), wh_n], axis=-1)
    bot = jnp.broadcast_to(bot[None], (L, H, 4 * H))
    wg = jnp.concatenate([top, bot], axis=1).astype(jnp.bfloat16)          # [L, 2H, 4H]

    # Packed biases [br | bz | bni | bnh] (r/z get bih+bhh; n keeps them split).
    bih, bhh = params["bih"], params["bhh"]
    b4 = jnp.concatenate([bih[:, 0:H] + bhh[:, 0:H],
                          bih[:, H:2 * H] + bhh[:, H:2 * H],
                          bih[:, 2 * H:3 * H],
                          bhh[:, 2 * H:3 * H]], axis=-1)                   # [1, 4H]

    # Head weights as row vectors (VPU reduction in-kernel; no [H,1] MXU tiles).
    whx = jnp.pad(params["whead_x"], ((0, H - I), (0, 0))).T               # [1, H]
    whh_head = params["whead_h"].T                                         # [1, H]
    counts = pool.sum(axis=1, keepdims=True)                               # [B, 1]
    bpool = counts * params["bhead"][0, 0]                                 # [B, 1]

    inputs = (xh, adj.astype(jnp.bfloat16), pool, wg, b4, whx, whh_head, bpool)

    # VMEM budget: actual footprint (+ scratch + output) with headroom, capped at 48 MiB
    # so it stays well inside v7x's 64 MiB physical VMEM per TensorCore.
    def _nbytes(a):
        return int(a.size) * jnp.dtype(a.dtype).itemsize
    footprint = sum(_nbytes(a) for a in inputs) + N * 2 * H * 4 + B * 4
    vmem_limit = int(min(48 * 1024 * 1024,
                         max(4 * 1024 * 1024, 2 * footprint + 2 * 1024 * 1024)))

    vmem = pl.BlockSpec(memory_space=pltpu.MemorySpace.VMEM)
    out = pl.pallas_call(
        functools.partial(_ggnn_flatsum_kernel, num_layers, H),
        out_shape=jax.ShapeDtypeStruct((B, 1), jnp.float32),
        in_specs=[vmem] * len(inputs),
        out_specs=vmem,
        scratch_shapes=[pltpu.VMEM((N, 2 * H), jnp.float32)],
        compiler_params=pltpu.CompilerParams(vmem_limit_bytes=vmem_limit),
    )(*inputs)
    return out[:, 0]  # squeeze(1) -> [B]


def reference_forward(x, adj, batch_index, params, num_layers, num_graphs):
    """Pure-JAX f32 reference mirroring the PyTorch module (inference mode)."""
    N, I = x.shape
    H = params["w"].shape[-1]
    h = jnp.pad(x, ((0, 0), (0, H - I)))
    for l in range(num_layers):
        m = adj @ (h @ params["w"][l])
        gi = m @ params["wih_t"] + params["bih"]
        gh = h @ params["whh_t"] + params["bhh"]
        r = jax.nn.sigmoid(gi[:, :H] + gh[:, :H])
        z = jax.nn.sigmoid(gi[:, H:2 * H] + gh[:, H:2 * H])
        n = jnp.tanh(gi[:, 2 * H:] + r * gh[:, 2 * H:])
        h = (1.0 - z) * n + z * h
    score = x @ params["whead_x"] + h @ params["whead_h"] + params["bhead"]   # [N, 1]
    pooled = jax.ops.segment_sum(score[:, 0], batch_index, num_segments=num_graphs)
    return jax.nn.sigmoid(pooled)


def make_params(key, input_channels, hidden_channels, num_layers):
    I, H, L = input_channels, hidden_channels, num_layers
    ks = jax.random.split(key, 8)
    scale = 1.0 / jnp.sqrt(H)
    params = {
        # GatedGraphConv per-layer weights [L, H, H]
        "w": jax.random.uniform(ks[0], (L, H, H), jnp.float32, -scale, scale),
        # GRUCell weights pre-transposed for row-vector matmul: [H, 3H], gate order (r,z,n)
        "wih_t": jax.random.uniform(ks[1], (H, 3 * H), jnp.float32, -scale, scale),
        "whh_t": jax.random.uniform(ks[2], (H, 3 * H), jnp.float32, -scale, scale),
        "bih": jax.random.uniform(ks[3], (1, 3 * H), jnp.float32, -scale, scale),
        "bhh": jax.random.uniform(ks[4], (1, 3 * H), jnp.float32, -scale, scale),
        # head Linear(I+H, 1) weight split into the x-part [I,1] and h-part [H,1]
        "whead_x": jax.random.uniform(ks[5], (I, 1), jnp.float32, -scale, scale),
        "whead_h": jax.random.uniform(ks[6], (H, 1), jnp.float32, -scale, scale),
        "bhead": jax.random.uniform(ks[7], (1, 1), jnp.float32, -scale, scale),
    }
    return params


if __name__ == "__main__":
    INPUT_CHANNELS = 16     # must be <= hidden_channels (GatedGraphConv requirement)
    HIDDEN_CHANNELS = 32
    NUM_LAYERS = 3
    NUM_NODES = 16
    NUM_EDGES = 24
    NUM_GRAPHS = 2

    key = jax.random.PRNGKey(0)
    k_x, k_e, k_p = jax.random.split(key, 3)

    # node features
    x = jax.random.normal(k_x, (NUM_NODES, INPUT_CHANNELS), jnp.float32)

    # random edge_index (PyG notation: row 0 = source, row 1 = target)
    edge_index = jax.random.randint(k_e, (2, NUM_EDGES), 0, NUM_NODES)
    src, dst = edge_index[0], edge_index[1]
    # dense adjacency: A[dst, src] += 1   (aggr='add' message passing == A @ m)
    adj = jnp.zeros((NUM_NODES, NUM_NODES), jnp.float32).at[dst, src].add(1.0)

    # batch assignment: first half of nodes -> graph 0, second half -> graph 1
    batch_index = jnp.concatenate([
        jnp.zeros(NUM_NODES // 2, jnp.int32),
        jnp.ones(NUM_NODES - NUM_NODES // 2, jnp.int32),
    ])
    # pooling matrix [B, N]: one-hot of batch_index
    pool = (batch_index[None, :] == jnp.arange(NUM_GRAPHS)[:, None]).astype(jnp.float32)

    params = make_params(k_p, INPUT_CHANNELS, HIDDEN_CHANNELS, NUM_LAYERS)

    out = ggnn_flat_sum(x, adj, pool, params, NUM_LAYERS)
    out = jax.block_until_ready(out)

    ref = reference_forward(x, adj, batch_index, params, NUM_LAYERS, NUM_GRAPHS)
    assert out.shape == (NUM_GRAPHS,)
    # tolerance loosened: the layer loop now runs entirely on the bf16 MXU path
    # (bf16 adjacency/h/A@h/weights, f32 accumulation); head/pool stays f32.
    assert jnp.allclose(out, ref, rtol=3e-2, atol=3e-2), (out, ref)

    print("KERNEL_OK")
</pallas_src>

<mosaic_0001>
module attributes {stable_mosaic.version = 11 : i64} {
  func.func @_ggnn_flatsum_kernel(%arg0: memref<16x32xf32, #tpu.memory_space<vmem>>, %arg1: memref<16x16xbf16, #tpu.memory_space<vmem>>, %arg2: memref<2x16xf32, #tpu.memory_space<vmem>>, %arg3: memref<3x64x128xbf16, #tpu.memory_space<vmem>>, %arg4: memref<1x128xf32, #tpu.memory_space<vmem>>, %arg5: memref<1x32xf32, #tpu.memory_space<vmem>>, %arg6: memref<1x32xf32, #tpu.memory_space<vmem>>, %arg7: memref<2x1xf32, #tpu.memory_space<vmem>>, %arg8: memref<2x1xf32, #tpu.memory_space<vmem>>, %arg9: memref<16x64xf32, #tpu.memory_space<vmem>>) attributes {dimension_semantics = [], scalar_prefetch = 0 : i64, scratch_operands = 1 : i64, tpu.core_type = #tpu.core_type<tc>} {
    %c0 = arith.constant 0 : index
    %c0_0 = arith.constant 0 : index
    %0 = vector.load %arg0[%c0, %c0_0] : memref<16x32xf32, #tpu.memory_space<vmem>>, vector<16x32xf32>
    %c0_1 = arith.constant 0 : index
    %c0_2 = arith.constant 0 : index
    %1 = vector.load %arg1[%c0_1, %c0_2] : memref<16x16xbf16, #tpu.memory_space<vmem>>, vector<16x16xbf16>
    %c0_3 = arith.constant 0 : index
    %c0_4 = arith.constant 0 : index
    %2 = vector.load %arg4[%c0_3, %c0_4] : memref<1x128xf32, #tpu.memory_space<vmem>>, vector<1x128xf32>
    %3 = arith.truncf %0 : vector<16x32xf32> to vector<16x32xbf16>
    %cst = arith.constant dense<0.000000e+00> : vector<16x32xf32>
    %4 = tpu.matmul %1, %3, %cst {dimension_numbers = #tpu.dot_dimension_numbers<[1], [0], [0], [1], [0, 0, 1, 1], [], []>} : vector<16x16xbf16>, vector<16x32xbf16>, vector<16x32xf32> -> vector<16x32xf32>
    %c0_5 = arith.constant 0 : index
    %c0_6 = arith.constant 0 : index
    %5 = vector.load %arg9[%c0_5, %c0_6] : memref<16x64xf32, #tpu.memory_space<vmem>>, vector<16x32xf32>
    tpu.vector_store %arg9[%c0_5, %c0_6], %4 {strides = array<i32>} : memref<16x64xf32, #tpu.memory_space<vmem>>, vector<16x32xf32>,
    %c0_7 = arith.constant 0 : index
    %c32 = arith.constant 32 : index
    %6 = vector.load %arg9[%c0_7, %c32] : memref<16x64xf32, #tpu.memory_space<vmem>>, vector<16x32xf32>
    tpu.vector_store %arg9[%c0_7, %c32], %0 {strides = array<i32>} : memref<16x64xf32, #tpu.memory_space<vmem>>, vector<16x32xf32>,
    %c0_8 = arith.constant 0 : index
    %c0_9 = arith.constant 0 : index
    %7 = vector.load %arg9[%c0_8, %c0_9] : memref<16x64xf32, #tpu.memory_space<vmem>>, vector<16x64xf32>
    %8 = arith.truncf %7 : vector<16x64xf32> to vector<16x64xbf16>
    %c0_10 = arith.constant 0 : index
    %c0_11 = arith.constant 0 : index
    %c0_12 = arith.constant 0 : index
    %9 = vector.load %arg3[%c0_10, %c0_11, %c0_12] : memref<3x64x128xbf16, #tpu.memory_space<vmem>>, vector<1x64x128xbf16>
    %10 = vector.shape_cast %9 : vector<1x64x128xbf16> to vector<64x128xbf16>
    %cst_13 = arith.constant dense<0.000000e+00> : vector<16x128xf32>
    %11 = tpu.matmul %8, %10, %cst_13 {dimension_numbers = #tpu.dot_dimension_numbers<[1], [0], [0], [1], [0, 0, 1, 1], [], []>} : vector<16x64xbf16>, vector<64x128xbf16>, vector<16x128xf32> -> vector<16x128xf32>
    %12 = vector.broadcast %2 : vector<1x128xf32> to vector<16x128xf32>
    %13 = arith.addf %11, %12 : vector<16x128xf32>
    %14 = vector.extract_strided_slice %13 {offsets = [0, 0], sizes = [16, 32], strides = [1, 1]} : vector<16x128xf32> to vector<16x32xf32>
    %15 = arith.negf %14 : vector<16x32xf32>
    %16 = math.exp %15 : vector<16x32xf32>
    %cst_14 = arith.constant 1.000000e+00 : f32
    %17 = vector.broadcast %cst_14 : f32 to vector<16x32xf32>
    %18 = arith.addf %17, %16 : vector<16x32xf32>
    %19 = arith.divf %17, %18 : vector<16x32xf32>
    %20 = vector.extract_strided_slice %13 {offsets = [0, 32], sizes = [16, 32], strides = [1, 1]} : vector<16x128xf32> to vector<16x32xf32>
    %21 = arith.negf %20 : vector<16x32xf32>
    %22 = math.exp %21 : vector<16x32xf32>
    %cst_15 = arith.constant 1.000000e+00 : f32
    %23 = vector.broadcast %cst_15 : f32 to vector<16x32xf32>
    %24 = arith.addf %23, %22 : vector<16x32xf32>
    %25 = arith.divf %23, %24 : vector<16x32xf32>
    %26 = vector.extract_strided_slice %13 {offsets = [0, 64], sizes = [16, 32], strides = [1, 1]} : vector<16x128xf32> to vector<16x32xf32>
    %27 = vector.extract_strided_slice %13 {offsets = [0, 96], sizes = [16, 32], strides = [1, 1]} : vector<16x128xf32> to vector<16x32xf32>
    %28 = arith.mulf %19, %27 : vector<16x32xf32>
    %29 = arith.addf %26, %28 : vector<16x32xf32>
    %30 = math.tanh %29 : vector<16x32xf32>
    %cst_16 = arith.constant 1.000000e+00 : f32
    %31 = vector.broadcast %cst_16 : f32 to vector<16x32xf32>
    %32 = arith.subf %31, %25 : vector<16x32xf32>
    %33 = arith.mulf %32, %30 : vector<16x32xf32>
    %34 = arith.mulf %25, %0 : vector<16x32xf32>
    %35 = arith.addf %33, %34 : vector<16x32xf32>
    %36 = arith.truncf %35 : vector<16x32xf32> to vector<16x32xbf16>
    %cst_17 = arith.constant dense<0.000000e+00> : vector<16x32xf32>
    %37 = tpu.matmul %1, %36, %cst_17 {dimension_numbers = #tpu.dot_dimension_numbers<[1], [0], [0], [1], [0, 0, 1, 1], [], []>} : vector<16x16xbf16>, vector<16x32xbf16>, vector<16x32xf32> -> vector<16x32xf32>
    %c0_18 = arith.constant 0 : index
    %c0_19 = arith.constant 0 : index
    %38 = vector.load %arg9[%c0_18, %c0_19] : memref<16x64xf32, #tpu.memory_space<vmem>>, vector<16x32xf32>
    tpu.vector_store %arg9[%c0_18, %c0_19], %37 {strides = array<i32>} : memref<16x64xf32, #tpu.memory_space<vmem>>, vector<16x32xf32>,
    %c0_20 = arith.constant 0 : index
    %c32_21 = arith.constant 32 : index
    %39 = vector.load %arg9[%c0_20, %c32_21] : memref<16x64xf32, #tpu.memory_space<vmem>>, vector<16x32xf32>
    tpu.vector_store %arg9[%c0_20, %c32_21], %35 {strides = array<i32>} : memref<16x64xf32, #tpu.memory_space<vmem>>, vector<16x32xf32>,
    %c0_22 = arith.constant 0 : index
    %c0_23 = arith.constant 0 : index
    %40 = vector.load %arg9[%c0_22, %c0_23] : memref<16x64xf32, #tpu.memory_space<vmem>>, vector<16x64xf32>
    %41 = arith.truncf %40 : vector<16x64xf32> to vector<16x64xbf16>
    %c1 = arith.constant 1 : index
    %c0_24 = arith.constant 0 : index
    %c0_25 = arith.constant 0 : index
    %42 = vector.load %arg3[%c1, %c0_24, %c0_25] : memref<3x64x128xbf16, #tpu.memory_space<vmem>>, vector<1x64x128xbf16>
    %43 = vector.shape_cast %42 : vector<1x64x128xbf16> to vector<64x128xbf16>
    %cst_26 = arith.constant dense<0.000000e+00> : vector<16x128xf32>
    %44 = tpu.matmul %41, %43, %cst_26 {dimension_numbers = #tpu.dot_dimension_numbers<[1], [0], [0], [1], [0, 0, 1, 1], [], []>} : vector<16x64xbf16>, vector<64x128xbf16>, vector<16x128xf32> -> vector<16x128xf32>
    %45 = vector.broadcast %2 : vector<1x128xf32> to vector<16x128xf32>
    %46 = arith.addf %44, %45 : vector<16x128xf32>
    %47 = vector.extract_strided_slice %46 {offsets = [0, 0], sizes = [16, 32], strides = [1, 1]} : vector<16x128xf32> to vector<16x32xf32>
    %48 = arith.negf %47 : vector<16x32xf32>
    %49 = math.exp %48 : vector<16x32xf32>
    %cst_27 = arith.constant 1.000000e+00 : f32
    %50 = vector.broadcast %cst_27 : f32 to vector<16x32xf32>
    %51 = arith.addf %50, %49 : vector<16x32xf32>
    %52 = arith.divf %50, %51 : vector<16x32xf32>
    %53 = vector.extract_strided_slice %46 {offsets = [0, 32], sizes = [16, 32], strides = [1, 1]} : vector<16x128xf32> to vector<16x32xf32>
    %54 = arith.negf %53 : vector<16x32xf32>
    %55 = math.exp %54 : vector<16x32xf32>
    %cst_28 = arith.constant 1.000000e+00 : f32
    %56 = vector.broadcast %cst_28 : f32 to vector<16x32xf32>
    %57 = arith.addf %56, %55 : vector<16x32xf32>
    %58 = arith.divf %56, %57 : vector<16x32xf32>
    %59 = vector.extract_strided_slice %46 {offsets = [0, 64], sizes = [16, 32], strides = [1, 1]} : vector<16x128xf32> to vector<16x32xf32>
    %60 = vector.extract_strided_slice %46 {offsets = [0, 96], sizes = [16, 32], strides = [1, 1]} : vector<16x128xf32> to vector<16x32xf32>
    %61 = arith.mulf %52, %60 : vector<16x32xf32>
    %62 = arith.addf %59, %61 : vector<16x32xf32>
    %63 = math.tanh %62 : vector<16x32xf32>
    %cst_29 = arith.constant 1.000000e+00 : f32
    %64 = vector.broadcast %cst_29 : f32 to vector<16x32xf32>
    %65 = arith.subf %64, %58 : vector<16x32xf32>
    %66 = arith.mulf %65, %63 : vector<16x32xf32>
    %67 = arith.mulf %58, %35 : vector<16x32xf32>
    %68 = arith.addf %66, %67 : vector<16x32xf32>
    %69 = arith.truncf %68 : vector<16x32xf32> to vector<16x32xbf16>
    %cst_30 = arith.constant dense<0.000000e+00> : vector<16x32xf32>
    %70 = tpu.matmul %1, %69, %cst_30 {dimension_numbers = #tpu.dot_dimension_numbers<[1], [0], [0], [1], [0, 0, 1, 1], [], []>} : vector<16x16xbf16>, vector<16x32xbf16>, vector<16x32xf32> -> vector<16x32xf32>
    %c0_31 = arith.constant 0 : index
    %c0_32 = arith.constant 0 : index
    %71 = vector.load %arg9[%c0_31, %c0_32] : memref<16x64xf32, #tpu.memory_space<vmem>>, vector<16x32xf32>
    tpu.vector_store %arg9[%c0_31, %c0_32], %70 {strides = array<i32>} : memref<16x64xf32, #tpu.memory_space<vmem>>, vector<16x32xf32>,
    %c0_33 = arith.constant 0 : index
    %c32_34 = arith.constant 32 : index
    %72 = vector.load %arg9[%c0_33, %c32_34] : memref<16x64xf32, #tpu.memory_space<vmem>>, vector<16x32xf32>
    tpu.vector_store %arg9[%c0_33, %c32_34], %68 {strides = array<i32>} : memref<16x64xf32, #tpu.memory_space<vmem>>, vector<16x32xf32>,
    %c0_35 = arith.constant 0 : index
    %c0_36 = arith.constant 0 : index
    %73 = vector.load %arg9[%c0_35, %c0_36] : memref<16x64xf32, #tpu.memory_space<vmem>>, vector<16x64xf32>
    %74 = arith.truncf %73 : vector<16x64xf32> to vector<16x64xbf16>
    %c2 = arith.constant 2 : index
    %c0_37 = arith.constant 0 : index
    %c0_38 = arith.constant 0 : index
    %75 = vector.load %arg3[%c2, %c0_37, %c0_38] : memref<3x64x128xbf16, #tpu.memory_space<vmem>>, vector<1x64x128xbf16>
    %76 = vector.shape_cast %75 : vector<1x64x128xbf16> to vector<64x128xbf16>
    %cst_39 = arith.constant dense<0.000000e+00> : vector<16x128xf32>
    %77 = tpu.matmul %74, %76, %cst_39 {dimension_numbers = #tpu.dot_dimension_numbers<[1], [0], [0], [1], [0, 0, 1, 1], [], []>} : vector<16x64xbf16>, vector<64x128xbf16>, vector<16x128xf32> -> vector<16x128xf32>
    %78 = vector.broadcast %2 : vector<1x128xf32> to vector<16x128xf32>
    %79 = arith.addf %77, %78 : vector<16x128xf32>
    %80 = vector.extract_strided_slice %79 {offsets = [0, 0], sizes = [16, 32], strides = [1, 1]} : vector<16x128xf32> to vector<16x32xf32>
    %81 = arith.negf %80 : vector<16x32xf32>
    %82 = math.exp %81 : vector<16x32xf32>
    %cst_40 = arith.constant 1.000000e+00 : f32
    %83 = vector.broadcast %cst_40 : f32 to vector<16x32xf32>
    %84 = arith.addf %83, %82 : vector<16x32xf32>
    %85 = arith.divf %83, %84 : vector<16x32xf32>
    %86 = vector.extract_strided_slice %79 {offsets = [0, 32], sizes = [16, 32], strides = [1, 1]} : vector<16x128xf32> to vector<16x32xf32>
    %87 = arith.negf %86 : vector<16x32xf32>
    %88 = math.exp %87 : vector<16x32xf32>
    %cst_41 = arith.constant 1.000000e+00 : f32
    %89 = vector.broadcast %cst_41 : f32 to vector<16x32xf32>
    %90 = arith.addf %89, %88 : vector<16x32xf32>
    %91 = arith.divf %89, %90 : vector<16x32xf32>
    %92 = vector.extract_strided_slice %79 {offsets = [0, 64], sizes = [16, 32], strides = [1, 1]} : vector<16x128xf32> to vector<16x32xf32>
    %93 = vector.extract_strided_slice %79 {offsets = [0, 96], sizes = [16, 32], strides = [1, 1]} : vector<16x128xf32> to vector<16x32xf32>
    %94 = arith.mulf %85, %93 : vector<16x32xf32>
    %95 = arith.addf %92, %94 : vector<16x32xf32>
    %96 = math.tanh %95 : vector<16x32xf32>
    %cst_42 = arith.constant 1.000000e+00 : f32
    %97 = vector.broadcast %cst_42 : f32 to vector<16x32xf32>
    %98 = arith.subf %97, %91 : vector<16x32xf32>
    %99 = arith.mulf %98, %96 : vector<16x32xf32>
    %100 = arith.mulf %91, %68 : vector<16x32xf32>
    %101 = arith.addf %99, %100 : vector<16x32xf32>
    %c0_43 = arith.constant 0 : index
    %c0_44 = arith.constant 0 : index
    %102 = vector.load %arg2[%c0_43, %c0_44] : memref<2x16xf32, #tpu.memory_space<vmem>>, vector<2x16xf32>
    %cst_45 = arith.constant dense<0.000000e+00> : vector<2x32xf32>
    %103 = tpu.matmul %102, %0, %cst_45 {dimension_numbers = #tpu.dot_dimension_numbers<[1], [0], [0], [1], [0, 0, 1, 1], [], []>} : vector<2x16xf32>, vector<16x32xf32>, vector<2x32xf32> -> vector<2x32xf32>
    %cst_46 = arith.constant dense<0.000000e+00> : vector<2x32xf32>
    %104 = tpu.matmul %102, %101, %cst_46 {dimension_numbers = #tpu.dot_dimension_numbers<[1], [0], [0], [1], [0, 0, 1, 1], [], []>} : vector<2x16xf32>, vector<16x32xf32>, vector<2x32xf32> -> vector<2x32xf32>
    %c0_47 = arith.constant 0 : index
    %c0_48 = arith.constant 0 : index
    %105 = vector.load %arg5[%c0_47, %c0_48] : memref<1x32xf32, #tpu.memory_space<vmem>>, vector<1x32xf32>
    %106 = vector.broadcast %105 : vector<1x32xf32> to vector<2x32xf32>
    %107 = arith.mulf %103, %106 : vector<2x32xf32>
    %c0_49 = arith.constant 0 : index
    %c0_50 = arith.constant 0 : index
    %108 = vector.load %arg6[%c0_49, %c0_50] : memref<1x32xf32, #tpu.memory_space<vmem>>, vector<1x32xf32>
    %109 = vector.broadcast %108 : vector<1x32xf32> to vector<2x32xf32>
    %110 = arith.mulf %104, %109 : vector<2x32xf32>
    %111 = arith.addf %107, %110 : vector<2x32xf32>
    %cst_51 = arith.constant dense<0.000000e+00> : vector<2xf32>
    %112 = vector.multi_reduction <add>, %111, %cst_51 [1] : vector<2x32xf32> to vector<2xf32>
    %113 = vector.shape_cast %112 : vector<2xf32> to vector<2x1xf32>
    %c0_52 = arith.constant 0 : index
    %c0_53 = arith.constant 0 : index
    %114 = vector.load %arg7[%c0_52, %c0_53] : memref<2x1xf32, #tpu.memory_space<vmem>>, vector<2x1xf32>
    %115 = arith.addf %113, %114 : vector<2x1xf32>
    %116 = arith.negf %115 : vector<2x1xf32>
    %117 = math.exp %116 : vector<2x1xf32>
    %cst_54 = arith.constant 1.000000e+00 : f32
    %118 = vector.broadcast %cst_54 : f32 to vector<2x1xf32>
    %119 = arith.addf %118, %117 : vector<2x1xf32>
    %120 = arith.divf %118, %119 : vector<2x1xf32>
    %c0_55 = arith.constant 0 : index
    %c0_56 = arith.constant 0 : index
    %121 = vector.load %arg8[%c0_55, %c0_56] : memref<2x1xf32, #tpu.memory_space<vmem>>, vector<2x1xf32>
    tpu.vector_store %arg8[%c0_55, %c0_56], %120 {strides = array<i32>} : memref<2x1xf32, #tpu.memory_space<vmem>>, vector<2x1xf32>,
    return
  }
}

</mosaic_0001>

<bundles_post_ra>
// kernel: tpu_custom_call.1
= control target key start
LH: loop header
LB: loop body
LE: loop exit
PB: predicated region body
PF: predicated region fallthrough
CT: control target
= control target key end

     0   :  { %13 = vsyncpa [#allocation4], 0  ;;  %s1034_s0 = inlined_call_operand.hbm [shape: f32[16,32], index: 0, kind: input, shape index: {}]   ;;  %s1035_s1 = inlined_call_operand.hbm [shape: bf16[16,16], index: 1, kind: input, shape index: {}]   ;;  %s1036_s2 = inlined_call_operand.vmem [shape: f32[2,16], index: 2, kind: input, shape index: {}]   ;;  %s1037_s3 = inlined_call_operand.hbm [shape: bf16[3,64,128], index: 3, kind: input, shape index: {}]   ;;  %s1038_s4 = inlined_call_operand.vmem [shape: f32[1,128], index: 4, kind: input, shape index: {}]   ;;  %s1039_s5 = inlined_call_operand.vmem [shape: f32[1,32], index: 5, kind: input, shape index: {}]   ;;  %s1040_s6 = inlined_call_operand.vmem [shape: f32[1,32], index: 6, kind: input, shape index: {}]   ;;  %s1041_s7 = inlined_call_operand.vmem [shape: f32[2,1], index: 7, kind: input, shape index: {}]   ;;  %s1042_s8 = inlined_call_operand.vmem [shape: f32[2,1], index: 8, kind: output, shape index: {}]  }
   0x1   :  { %14 = vsyncpa [#allocation6], 0  ;;  %s32_s29 = sshll.u32 %s1035_s1, 4  ;;  %s865_s30 = smov [#allocation5]   ;;  %s33_s29 = int_to_ptr.hbm [resolvable:$true] %s32_s29 }
   0x2   :  { %s34_s9 = sshll.u32 %s865_s30, 4  ;;  %s19_s12 = sshll.u32 %s1034_s0, 4  ;;  %s35_s9 = int_to_ptr.vmem [resolvable:$true] %s34_s9  ;;  %s20_s12 = int_to_ptr.hbm [resolvable:$true] %s19_s12 }
   0x3   :  { %s866_s13 = smov 64   ;;  %s867_s14 = smov 4  }
   0x4   :  { %40 = dma.hbm_to_vmem [thread:$0]  %s33_s29, 128, %s35_s9, [#allocation6], %s866_s13, %s866_s13, %s867_s14  }
   0x5   :  { %s868_s15 = smov [#allocation3]   ;;  %s869_s17 = smov 128  }
   0x6   :  { %s21_s16 = sshll.u32 %s868_s15, 4  ;;  %s870_s18 = smov 8   ;;  %s22_s16 = int_to_ptr.vmem [resolvable:$true] %s21_s16 }
   0x7   :  { %27 = dma.hbm_to_vmem [thread:$0]  %s20_s12, 256, %s22_s16, [#allocation4], %s869_s17, %s869_s17, %s870_s18  }
   0x8   :  { %s47_s20 = sshll.u32 %s1037_s3, 4  ;;  %s871_s21 = smov [#allocation7]   ;;  %s48_s20 = int_to_ptr.hbm [resolvable:$true] %s47_s20 }
   0x9   :  { %s49_s22 = sshll.u32 %s871_s21, 4  ;;  %s50_s22 = int_to_ptr.vmem [resolvable:$true] %s49_s22 }
   0xa   :  { %55 = dma.hbm_to_vmem [thread:$0]  %s48_s20, 1536, %s50_s22, [#allocation6], %s866_s13, %s866_s13, %s867_s14  }
   0xb   :  { %861 = dma.done.wait [#allocation4], 256  }
   0xc   :  { %862 = vsyncadd [#allocation4], 4294967040 }
   0xd   :  { %863 = dma.done.wait [#allocation6], 1664  }
   0xe   :  { %864 = vsyncadd [#allocation6], 4294965632  ;;  %v77_v0 = vld [vmem:[#allocation3] sm:$0xff]  ;;  %v78_v1 = vld [vmem:[#allocation3 + $0x8] sm:$0xff]  ;;  %s872_s0 = smov 32   ;;  %vm88_vm0 = vcmask 130048  }
   0xf   :  { %v82_v2 = vpack.c.bf16 %v78_v1, %v77_v0  ;;  %111 = vrot.lane.b32.xlu0 %v77_v0, %s872_s0  ;;  %v933_v3 = vld [vmem:[#allocation5] sm:$0xff]  ;;  %v722_v5 = vld [vmem:[#allocation7 + $0x10] sm:$0xff]  ;;  %v721_v6 = vld [vmem:[#allocation7 + $0x8] sm:$0xff]  ;;  %vm106_vm1 = vcmask 261120   ;;  %vm117_vm2 = vcmask 523520   ;;  %vm158_vm3 = vcmask 523264  }
  0x10   :  { %v723_v4 = vld [vmem:[#allocation7 + $0x18] sm:$0xff]  ;;  %v720_v7 = vld [vmem:[#allocation7] sm:$0xff] }
  0x11   :  { %99 = vmatpush.bf16.msra.mxu0 %v82_v2  ;;  %166 = vmatpush.bf16.msra.mxu1 %v723_v4  ;;  %v952_v15 = vld [vmem:[%s1038_s4] ss:$0 sm:$0xff]  ;;  %s873_s4 = smov 96  }
  0x14   :  { %656 = vmatmul.msk.bf16.vlgmr.msra.gmra.mxu0 %vm88_vm0, %v933_v3 }
  0x15   :  { %167 = vmatpush.bf16.msra.mxu1 %v722_v5  ;;  %v727_v5 = vld [vmem:[#allocation7 + $0x38] sm:$0xff] }
  0x16   :  { %318 = vmatpush.bf16.msra.mxu3 %v727_v5 }
  0x17   :  { %113 = vrot.lane.b32.xlu0 %v78_v1, %s872_s0 }
  0x19   :  { %168 = vmatpush.bf16.msra.mxu1 %v721_v6  ;;  %v726_v6 = vld [vmem:[#allocation7 + $0x30] sm:$0xff] }
  0x1a   :  { %319 = vmatpush.bf16.msra.mxu3 %v726_v6  ;;  %v731_v6 = vld [vmem:[#allocation7 + $0x58] sm:$0xff] }
  0x1d   :  { %169 = vmatpush.bf16.msra.mxu1 %v720_v7  ;;  %v725_v7 = vld [vmem:[#allocation7 + $0x28] sm:$0xff] }
  0x1e   :  { %320 = vmatpush.bf16.msra.mxu3 %v725_v7  ;;  %v728_v7 = vld [vmem:[#allocation7 + $0x40] sm:$0xff] }
  0x21   :  { %574 = vmatpush.msrb.mxu1 %v78_v1 }
  0x23   :  { %575 = vmatpush.msrb.mxu1 %v77_v0 }
  0x81   :  { %v938_v8 = vpop.permute.xlu0 %111 }
  0x89   :  { %v943_v10 = vpop.permute.xlu0 %113 }
  0x91   :  { %v101_v9 = vpop.f32.mrf.mxu0 }
  0x92   :  { %107 = vst.msk [vmem:[#allocation2] sm:$0xff] %vm106_vm1, %v101_v9 }
  0x93   :  { %118 = vst.msk [vmem:[#allocation2] sm:$0xff] %vm117_vm2, %v938_v8 }
  0x99   :  { %v103_v11 = vpop.f32.mrf.mxu0 }
  0x9a   :  { %108 = vst.msk [vmem:[#allocation2 + $0x8] sm:$0xff] %vm106_vm1, %v103_v11  ;;  %v120_v12 = vld [vmem:[#allocation2] sm:$0xff] }
  0x9b   :  { %119 = vst.msk [vmem:[#allocation2 + $0x8] sm:$0xff] %vm117_vm2, %v943_v10 }
  0xa2   :  { %v121_v13 = vld [vmem:[#allocation2 + $0x8] sm:$0xff] }
  0xa3   :  { %v122_v14 = vpack.c.bf16 %v121_v13, %v120_v12 }
  0xa5   :  { %673 = vmatmul.msk.bf16.vlgmr.msra.gmra.mxu1 %vm158_vm3, %v122_v14 }
 0x122   :  { %v171_v16 = vpop.f32.mrf.mxu1 }
 0x123   :  { %v172_v17 = vadd.f32 %v952_v15, %v171_v16 }
 0x125   :  { %216 = vrot.lane.b32.xlu1 %v172_v17, %s872_s0  ;;  %v674_v20 = vmul.f32 -1.442695, %v172_v17 }
 0x127   :  { %749 = vpow2.f32 %v674_v20 }
 0x12a   :  { %v173_v18 = vpop.f32.mrf.mxu1 }
 0x12b   :  { %v174_v19 = vadd.f32 %v952_v15, %v173_v18 }
 0x12d   :  { %218 = vrot.lane.b32.xlu1 %v174_v19, %s872_s0  ;;  %v675_v21 = vmul.f32 -1.442695, %v174_v19  ;;  %v750_v22 = vpop.eup %749 }
 0x12e   :  { %v182_v23 = vadd.f32 1.0, %v750_v22 }
 0x12f   :  { %751 = vpow2.f32 %v675_v21 }
 0x130   :  { %753 = vrcp.f32 %v182_v23  ;;  %v195_v34 = vand.u32 2147483648, %v182_v23  ;;  %vm189_vm5 = vweird.f32 %v182_v23  ;;  %v193_v35 = vand.u32 2147483647, %v182_v23 }
 0x132   :  { %v196_v38 = vor.u32 1.1754944e-38, %v195_v34  ;;  %vm194_vm7 = vcmp.eq.f32.partialorder %v193_v35, 8.507059e+37 }
 0x135   :  { %v752_v24 = vpop.eup %751 }
 0x136   :  { %v183_v25 = vadd.f32 1.0, %v752_v24  ;;  %v754_v26 = vpop.eup %753 }
 0x137   :  { %v185_v27 = vmul.f32 %v754_v26, %v182_v23  ;;  %vm190_vm4 = vweird.f32 %v754_v26 }
 0x138   :  { %755 = vrcp.f32 %v183_v25  ;;  %vm191_vm6 = vmor %vm189_vm5, %vm190_vm4  ;;  %v210_v43 = vand.u32 2147483648, %v183_v25  ;;  %vm204_vm9 = vweird.f32 %v183_v25  ;;  %v208_v44 = vand.u32 2147483647, %v183_v25 }
 0x139   :  { %v186_v28 = vsub.f32 1.0, %v185_v27 }
 0x13a   :  { %v211_v46 = vor.u32 1.1754944e-38, %v210_v43  ;;  %vm209_vm11 = vcmp.eq.f32.partialorder %v208_v44, 8.507059e+37 }
 0x13b   :  { %v187_v30 = vmul.f32 %v754_v26, %v186_v28 }
 0x13d   :  { %v188_v32 = vadd.f32 %v754_v26, %v187_v30 }
 0x13e   :  { %v756_v29 = vpop.eup %755 }
 0x13f   :  { %v200_v31 = vmul.f32 %v756_v29, %v183_v25  ;;  %v192_v36 = vsel %vm191_vm6, %v754_v26, %v188_v32  ;;  %vm205_vm8 = vweird.f32 %v756_v29 }
 0x140   :  { %v197_v40 = vsel %vm194_vm7, %v196_v38, %v192_v36  ;;  %vm206_vm10 = vmor %vm204_vm9, %vm205_vm8 }
 0x141   :  { %v201_v33 = vsub.f32 1.0, %v200_v31  ;;  %v236_v57 = vsub.f32 1.0, %v197_v40  ;;  %v248_v61 = vmul.f32 %v197_v40, %v938_v8  ;;  %v724_v8 = vld [vmem:[#allocation7 + $0x20] sm:$0xff] }
 0x142   :  { %321 = vmatpush.bf16.msra.mxu3 %v724_v8 }
 0x143   :  { %v202_v37 = vmul.f32 %v756_v29, %v201_v33 }
 0x145   :  { %v203_v42 = vadd.f32 %v756_v29, %v202_v37 }
 0x147   :  { %v207_v45 = vsel %vm206_vm10, %v756_v29, %v203_v42 }
 0x148   :  { %v212_v47 = vsel %vm209_vm11, %v211_v46, %v207_v45 }
 0x149   :  { %v237_v59 = vsub.f32 1.0, %v212_v47  ;;  %v249_v62 = vmul.f32 %v212_v47, %v943_v10 }
 0x197   :  { %v217_v39 = vpop.permute.xlu1 %216 }
 0x198   :  { %v222_v41 = vmul.f32 %v217_v39, %v197_v40 }
 0x19a   :  { %226 = vrot.lane.b32.xlu2 %v222_v41, %s866_s13 }
 0x19f   :  { %v219_v48 = vpop.permute.xlu1 %218 }
 0x1a0   :  { %v223_v49 = vmul.f32 %v219_v48, %v212_v47 }
 0x1a2   :  { %228 = vrot.lane.b32.xlu2 %v223_v49, %s866_s13 }
 0x1f4   :  { %v227_v50 = vpop.permute.xlu2 %226 }
 0x1f5   :  { %v232_v51 = vadd.f32 %v227_v50, %v172_v17 }
 0x1f7   :  { %757 = vtanh.f32 %v232_v51 }
 0x1fc   :  { %v229_v52 = vpop.permute.xlu2 %228 }
 0x1fd   :  { %v758_v53 = vpop.eup %757  ;;  %v233_v54 = vadd.f32 %v229_v52, %v174_v19 }
 0x1fe   :  { %240 = vrot.lane.b32.xlu0 %v758_v53, %s873_s4 }
 0x1ff   :  { %759 = vtanh.f32 %v233_v54 }
 0x205   :  { %v760_v55 = vpop.eup %759 }
 0x206   :  { %242 = vrot.lane.b32.xlu1 %v760_v55, %s873_s4 }
 0x270   :  { %v241_v56 = vpop.permute.xlu0 %240 }
 0x271   :  { %v246_v58 = vmul.f32 %v241_v56, %v236_v57 }
 0x273   :  { %v964_v0 = vadd.f32 %v248_v61, %v246_v58 }
 0x278   :  { %v243_v60 = vpop.permute.xlu1 %242 }
 0x279   :  { %v247_v63 = vmul.f32 %v243_v60, %v237_v59 }
 0x27b   :  { %v966_v1 = vadd.f32 %v249_v62, %v247_v63 }
 0x27d   :  { %v252_v2 = vpack.c.bf16 %v966_v1, %v964_v0 }
 0x27f   :  { %254 = vrot.lane.b32.xlu2 %v252_v2, %s873_s4 }
 0x2d9   :  { %v255_v4 = vpop.permute.xlu2 %254 }
 0x2da   :  { %264 = vmatpush.bf16.msra.mxu2 %v255_v4 }
 0x2dd   :  { %676 = vmatmul.msk.bf16.vlgmr.msra.gmra.mxu2 %vm88_vm0, %v933_v3 }
 0x2de   :  { %470 = vmatpush.bf16.msrb.mxu2 %v731_v6 }
 0x360   :  { %v266_v9 = vpop.f32.mrf.mxu2 }
 0x361   :  { %271 = vst.msk [vmem:[#allocation2] sm:$0xff] %vm106_vm1, %v266_v9 }
 0x362   :  { %273 = vst.msk [vmem:[#allocation2] sm:$0xff] %vm117_vm2, %v964_v0 }
 0x368   :  { %v268_v10 = vpop.f32.mrf.mxu2 }
 0x369   :  { %272 = vst.msk [vmem:[#allocation2 + $0x8] sm:$0xff] %vm106_vm1, %v268_v10  ;;  %v275_v11 = vld [vmem:[#allocation2] sm:$0xff] }
 0x36a   :  { %274 = vst.msk [vmem:[#allocation2 + $0x8] sm:$0xff] %vm117_vm2, %v966_v1 }
 0x371   :  { %v276_v12 = vld [vmem:[#allocation2 + $0x8] sm:$0xff] }
 0x372   :  { %v277_v13 = vpack.c.bf16 %v276_v12, %v275_v11 }
 0x374   :  { %693 = vmatmul.msk.bf16.vlgmr.msra.gmra.mxu3 %vm158_vm3, %v277_v13 }
 0x3f7   :  { %v323_v14 = vpop.f32.mrf.mxu3 }
 0x3f8   :  { %v324_v16 = vadd.f32 %v952_v15, %v323_v14 }
 0x3fa   :  { %368 = vrot.lane.b32.xlu0 %v324_v16, %s872_s0  ;;  %v694_v19 = vmul.f32 -1.442695, %v324_v16 }
 0x3fc   :  { %761 = vpow2.f32 %v694_v19 }
 0x3ff   :  { %v325_v17 = vpop.f32.mrf.mxu3 }
 0x400   :  { %v326_v18 = vadd.f32 %v952_v15, %v325_v17 }
 0x402   :  { %370 = vrot.lane.b32.xlu1 %v326_v18, %s872_s0  ;;  %v695_v20 = vmul.f32 -1.442695, %v326_v18  ;;  %v762_v21 = vpop.eup %761 }
 0x403   :  { %v334_v22 = vadd.f32 1.0, %v762_v21 }
 0x404   :  { %763 = vpow2.f32 %v695_v20 }
 0x405   :  { %765 = vrcp.f32 %v334_v22  ;;  %v347_v33 = vand.u32 2147483648, %v334_v22  ;;  %vm341_vm13 = vweird.f32 %v334_v22  ;;  %v345_v34 = vand.u32 2147483647, %v334_v22 }
 0x407   :  { %v348_v37 = vor.u32 1.1754944e-38, %v347_v33  ;;  %vm346_vm15 = vcmp.eq.f32.partialorder %v345_v34, 8.507059e+37 }
 0x40a   :  { %v764_v23 = vpop.eup %763 }
 0x40b   :  { %v335_v24 = vadd.f32 1.0, %v764_v23  ;;  %v766_v25 = vpop.eup %765 }
 0x40c   :  { %v337_v26 = vmul.f32 %v766_v25, %v334_v22  ;;  %vm342_vm12 = vweird.f32 %v766_v25 }
 0x40d   :  { %767 = vrcp.f32 %v335_v24  ;;  %vm343_vm14 = vmor %vm341_vm13, %vm342_vm12  ;;  %v362_v42 = vand.u32 2147483648, %v335_v24  ;;  %vm356_vm5 = vweird.f32 %v335_v24  ;;  %v360_v43 = vand.u32 2147483647, %v335_v24 }
 0x40e   :  { %v338_v27 = vsub.f32 1.0, %v337_v26  ;;  %vm619_vm13 = vcmask 254976  }
 0x40f   :  { %v363_v45 = vor.u32 1.1754944e-38, %v362_v42  ;;  %vm361_vm7 = vcmp.eq.f32.partialorder %v360_v43, 8.507059e+37 }
 0x410   :  { %v339_v29 = vmul.f32 %v766_v25, %v338_v27 }
 0x412   :  { %v340_v31 = vadd.f32 %v766_v25, %v339_v29 }
 0x413   :  { %v768_v28 = vpop.eup %767 }
 0x414   :  { %v352_v30 = vmul.f32 %v768_v28, %v335_v24  ;;  %v344_v35 = vsel %vm343_vm14, %v766_v25, %v340_v31  ;;  %vm357_vm4 = vweird.f32 %v768_v28 }
 0x415   :  { %v349_v39 = vsel %vm346_vm15, %v348_v37, %v344_v35  ;;  %vm358_vm6 = vmor %vm356_vm5, %vm357_vm4  ;;  %vm644_vm15 = vcmask 1024  }
 0x416   :  { %v353_v32 = vsub.f32 1.0, %v352_v30  ;;  %v388_v56 = vsub.f32 1.0, %v349_v39  ;;  %v400_v60 = vmul.f32 %v349_v39, %v964_v0  ;;  %v730_v0 = vld [vmem:[#allocation7 + $0x50] sm:$0xff] }
 0x417   :  { %471 = vmatpush.bf16.msrb.mxu2 %v730_v0 }
 0x418   :  { %v354_v36 = vmul.f32 %v768_v28, %v353_v32 }
 0x41a   :  { %v355_v41 = vadd.f32 %v768_v28, %v354_v36 }
 0x41c   :  { %v359_v44 = vsel %vm358_vm6, %v768_v28, %v355_v41 }
 0x41d   :  { %v364_v47 = vsel %vm361_vm7, %v363_v45, %v359_v44 }
 0x41e   :  { %v389_v58 = vsub.f32 1.0, %v364_v47  ;;  %v401_v61 = vmul.f32 %v364_v47, %v966_v1  ;;  %v729_v1 = vld [vmem:[#allocation7 + $0x48] sm:$0xff] }
 0x41f   :  { %472 = vmatpush.bf16.msrb.mxu2 %v729_v1  ;;  %v748_v1 = vld [vmem:[%s1040_s6] ss:$0 sm:$0xff] }
 0x423   :  { %473 = vmatpush.bf16.msrb.mxu2 %v728_v7 }
 0x46c   :  { %v369_v38 = vpop.permute.xlu0 %368 }
 0x46d   :  { %v374_v40 = vmul.f32 %v369_v38, %v349_v39 }
 0x46f   :  { %378 = vrot.lane.b32.xlu2 %v374_v40, %s866_s13 }
 0x474   :  { %v371_v46 = vpop.permute.xlu1 %370 }
 0x475   :  { %v375_v48 = vmul.f32 %v371_v46, %v364_v47 }
 0x477   :  { %380 = vrot.lane.b32.xlu0 %v375_v48, %s866_s13 }
 0x4c9   :  { %v379_v49 = vpop.permute.xlu2 %378 }
 0x4ca   :  { %v384_v50 = vadd.f32 %v379_v49, %v324_v16 }
 0x4cc   :  { %769 = vtanh.f32 %v384_v50 }
 0x4d2   :  { %v770_v51 = vpop.eup %769 }
 0x4d3   :  { %392 = vrot.lane.b32.xlu1 %v770_v51, %s873_s4 }
 0x4e9   :  { %v381_v52 = vpop.permute.xlu0 %380 }
 0x4ea   :  { %v385_v53 = vadd.f32 %v381_v52, %v326_v18 }
 0x4ec   :  { %771 = vtanh.f32 %v385_v53 }
 0x4f2   :  { %v772_v54 = vpop.eup %771 }
 0x4f3   :  { %394 = vrot.lane.b32.xlu2 %v772_v54, %s873_s4 }
 0x545   :  { %v393_v55 = vpop.permute.xlu1 %392 }
 0x546   :  { %v398_v57 = vmul.f32 %v393_v55, %v388_v56 }
 0x548   :  { %v990_v63 = vadd.f32 %v400_v60, %v398_v57 }
 0x54d   :  { %v395_v59 = vpop.permute.xlu2 %394 }
 0x54e   :  { %v399_v62 = vmul.f32 %v395_v59, %v389_v58 }
 0x550   :  { %v992_v2 = vadd.f32 %v401_v61, %v399_v62 }
 0x552   :  { %v404_v4 = vpack.c.bf16 %v992_v2, %v990_v63 }
 0x554   :  { %406 = vrot.lane.b32.xlu0 %v404_v4, %s873_s4  ;;  %v556_v4 = vld [vmem:[%s1036_s2] sm:$0x3] }
 0x555   :  { %716 = vmatmul.msk.f32.vlgmr.msrb.gmra.mxu1 %vm88_vm0, %v556_v4 }
 0x5c6   :  { %v407_v5 = vpop.permute.xlu0 %406 }
 0x5c7   :  { %416 = vmatpush.bf16.msrb.mxu0 %v407_v5 }
 0x5ca   :  { %696 = vmatmul.msk.bf16.vlgmr.msrb.gmra.mxu0 %vm88_vm0, %v933_v3 }
 0x647   :  { %v418_v8 = vpop.f32.mrf.mxu0 }
 0x648   :  { %423 = vst.msk [vmem:[#allocation2] sm:$0xff] %vm106_vm1, %v418_v8 }
 0x649   :  { %425 = vst.msk [vmem:[#allocation2] sm:$0xff] %vm117_vm2, %v990_v63 }
 0x64f   :  { %v420_v9 = vpop.f32.mrf.mxu0 }
 0x650   :  { %424 = vst.msk [vmem:[#allocation2 + $0x8] sm:$0xff] %vm106_vm1, %v420_v9  ;;  %v427_v3 = vld [vmem:[#allocation2] sm:$0xff] }
 0x651   :  { %426 = vst.msk [vmem:[#allocation2 + $0x8] sm:$0xff] %vm117_vm2, %v992_v2 }
 0x658   :  { %v428_v10 = vld [vmem:[#allocation2 + $0x8] sm:$0xff] }
 0x659   :  { %v429_v11 = vpack.c.bf16 %v428_v10, %v427_v3 }
 0x65b   :  { %713 = vmatmul.msk.bf16.vlgmr.msrb.gmra.mxu2 %vm158_vm3, %v429_v11  ;;  %v623_v11 = vld [vmem:[%s1041_s7] sm:$0x3] }
 0x6de   :  { %v475_v12 = vpop.f32.mrf.mxu2 }
 0x6df   :  { %v476_v13 = vadd.f32 %v952_v15, %v475_v12 }
 0x6e1   :  { %520 = vrot.lane.b32.xlu2 %v476_v13, %s872_s0  ;;  %v714_v17 = vmul.f32 -1.442695, %v476_v13 }
 0x6e3   :  { %773 = vpow2.f32 %v714_v17 }
 0x6e6   :  { %v477_v14 = vpop.f32.mrf.mxu2 }
 0x6e7   :  { %v478_v16 = vadd.f32 %v952_v15, %v477_v14 }
 0x6e9   :  { %522 = vrot.lane.b32.xlu1 %v478_v16, %s872_s0  ;;  %v774_v18 = vpop.eup %773  ;;  %v715_v23 = vmul.f32 -1.442695, %v478_v16 }
 0x6ea   :  { %v486_v19 = vadd.f32 1.0, %v774_v18 }
 0x6ec   :  { %775 = vrcp.f32 %v486_v19  ;;  %v499_v26 = vand.u32 2147483648, %v486_v19  ;;  %vm493_vm2 = vweird.f32 %v486_v19  ;;  %v497_v27 = vand.u32 2147483647, %v486_v19 }
 0x6ed   :  { %777 = vpow2.f32 %v715_v23 }
 0x6ee   :  { %v500_v29 = vor.u32 1.1754944e-38, %v499_v26  ;;  %vm498_vm8 = vcmp.eq.f32.partialorder %v497_v27, 8.507059e+37 }
 0x6f2   :  { %v776_v20 = vpop.eup %775 }
 0x6f3   :  { %v489_v21 = vmul.f32 %v776_v20, %v486_v19  ;;  %vm494_vm1 = vweird.f32 %v776_v20  ;;  %v778_v15 = vpop.eup %777 }
 0x6f4   :  { %vm495_vm3 = vmor %vm493_vm2, %vm494_vm1  ;;  %v487_v30 = vadd.f32 1.0, %v778_v15 }
 0x6f5   :  { %v490_v22 = vsub.f32 1.0, %v489_v21 }
 0x6f6   :  { %779 = vrcp.f32 %v487_v30  ;;  %v514_v39 = vand.u32 2147483648, %v487_v30  ;;  %vm508_vm10 = vweird.f32 %v487_v30  ;;  %v512_v40 = vand.u32 2147483647, %v487_v30 }
 0x6f7   :  { %v491_v24 = vmul.f32 %v776_v20, %v490_v22 }
 0x6f8   :  { %v515_v42 = vor.u32 1.1754944e-38, %v514_v39  ;;  %vm513_vm12 = vcmp.eq.f32.partialorder %v512_v40, 8.507059e+37 }
 0x6f9   :  { %v492_v25 = vadd.f32 %v776_v20, %v491_v24 }
 0x6fb   :  { %v496_v28 = vsel %vm495_vm3, %v776_v20, %v492_v25 }
 0x6fc   :  { %v501_v32 = vsel %vm498_vm8, %v500_v29, %v496_v28  ;;  %v780_v34 = vpop.eup %779 }
 0x6fd   :  { %v504_v35 = vmul.f32 %v780_v34, %v487_v30  ;;  %vm509_vm9 = vweird.f32 %v780_v34  ;;  %v540_v53 = vsub.f32 1.0, %v501_v32  ;;  %v552_v57 = vmul.f32 %v501_v32, %v990_v63  ;;  %v747_v63 = vld [vmem:[%s1039_s5] ss:$0 sm:$0xff] }
 0x6fe   :  { %vm510_vm11 = vmor %vm508_vm10, %vm509_vm9 }
 0x6ff   :  { %v505_v36 = vsub.f32 1.0, %v504_v35 }
 0x701   :  { %v506_v37 = vmul.f32 %v780_v34, %v505_v36 }
 0x703   :  { %v507_v38 = vadd.f32 %v780_v34, %v506_v37 }
 0x705   :  { %v511_v41 = vsel %vm510_vm11, %v780_v34, %v507_v38 }
 0x706   :  { %v516_v44 = vsel %vm513_vm12, %v515_v42, %v511_v41 }
 0x707   :  { %v541_v55 = vsub.f32 1.0, %v516_v44  ;;  %v553_v58 = vmul.f32 %v516_v44, %v992_v2  ;;  %v577_v2 = vpop.f32.mrf.mxu1 }
 0x708   :  { %v612_v7 = vmul.f32 %v747_v63, %v577_v2 }
 0x73b   :  { %v521_v31 = vpop.permute.xlu2 %520 }
 0x73c   :  { %v526_v33 = vmul.f32 %v521_v31, %v501_v32 }
 0x73e   :  { %530 = vrot.lane.b32.xlu1 %v526_v33, %s866_s13 }
 0x75b   :  { %v523_v43 = vpop.permute.xlu1 %522 }
 0x75c   :  { %v527_v45 = vmul.f32 %v523_v43, %v516_v44 }
 0x75e   :  { %532 = vrot.lane.b32.xlu0 %v527_v45, %s866_s13 }
 0x7b0   :  { %v531_v46 = vpop.permute.xlu1 %530 }
 0x7b1   :  { %v536_v47 = vadd.f32 %v531_v46, %v476_v13 }
 0x7b3   :  { %781 = vtanh.f32 %v536_v47 }
 0x7b9   :  { %v782_v48 = vpop.eup %781 }
 0x7ba   :  { %544 = vrot.lane.b32.xlu0 %v782_v48, %s873_s4 }
 0x7d0   :  { %v533_v49 = vpop.permute.xlu0 %532 }
 0x7d1   :  { %v537_v50 = vadd.f32 %v533_v49, %v478_v16 }
 0x7d3   :  { %783 = vtanh.f32 %v537_v50 }
 0x7d9   :  { %v784_v51 = vpop.eup %783 }
 0x7da   :  { %546 = vrot.lane.b32.xlu2 %v784_v51, %s873_s4 }
 0x82c   :  { %v545_v52 = vpop.permute.xlu0 %544 }
 0x82d   :  { %v550_v54 = vmul.f32 %v545_v52, %v540_v53 }
 0x82f   :  { %v554_v60 = vadd.f32 %v552_v57, %v550_v54 }
 0x834   :  { %v547_v56 = vpop.permute.xlu2 %546 }
 0x835   :  { %v551_v59 = vmul.f32 %v547_v56, %v541_v55 }
 0x837   :  { %v555_v61 = vadd.f32 %v553_v58, %v551_v59 }
 0x839   :  { %v741_v62 = vpack.i.bf16 %v554_v60, %v555_v61 }
 0x83b   :  { %742 = vrot.lane.b32.xlu1 %v741_v62, %s873_s4 }
 0x8ad   :  { %v743_v5 = vpop.permute.xlu1 %742 }
 0x8ae   :  { %v744_v6 = vunpack.i.l.bf16 %v743_v5  ;;  %v745_v0 = vunpack.i.h.bf16 %v743_v5 }
 0x8b0   :  { %602 = vmatpush.msrb.mxu3 %v744_v6 }
 0x8b2   :  { %603 = vmatpush.msrb.mxu3 %v745_v0 }
 0x8b3   :  { %717 = vmatmul.msk.f32.vlgmr.msrb.gmra.mxu3 %vm88_vm0, %v556_v4 }
 0x936   :  { %v605_v8 = vpop.f32.mrf.mxu3 }
 0x937   :  { %v617_v9 = vmul.f32 %v748_v1, %v605_v8 }
 0x939   :  { %v618_v3 = vadd.f32 %v617_v9, %v612_v7 }
 0x93b   :  { %v620_v10 = vsel %vm619_vm13, %v618_v3, 0.0 }
 0x93c   :  { %621 = vadd.xlane.f32.xlu2 %v620_v10 }
 0x9af   :  { %v622_v12 = vpop.xlane.xlu2 %621 }
 0x9b0   :  { %v624_v13 = vadd.f32 %v623_v11, %v622_v12 }
 0x9b2   :  { %v718_v14 = vmul.f32 -1.442695, %v624_v13 }
 0x9b4   :  { %785 = vpow2.f32 %v718_v14 }
 0x9ba   :  { %v786_v16 = vpop.eup %785 }
 0x9bb   :  { %v628_v17 = vadd.f32 1.0, %v786_v16 }
 0x9bd   :  { %787 = vrcp.f32 %v628_v17  ;;  %v640_v21 = vand.u32 2147483648, %v628_v17  ;;  %v638_v23 = vand.u32 2147483647, %v628_v17  ;;  %vm634_vm14 = vweird.f32 %v628_v17 }
 0x9bf   :  { %v641_v25 = vor.u32 1.1754944e-38, %v640_v21  ;;  %vm639_vm5 = vcmp.eq.f32.partialorder %v638_v23, 8.507059e+37 }
 0x9c3   :  { %v788_v18 = vpop.eup %787 }
 0x9c4   :  { %v630_v19 = vmul.f32 %v788_v18, %v628_v17  ;;  %vm635_vm0 = vweird.f32 %v788_v18 }
 0x9c5   :  { %vm636_vm4 = vmor %vm634_vm14, %vm635_vm0 }
 0x9c6   :  { %v631_v20 = vsub.f32 1.0, %v630_v19 }
 0x9c8   :  { %v632_v22 = vmul.f32 %v788_v18, %v631_v20 }
 0x9ca   :  { %v633_v24 = vadd.f32 %v788_v18, %v632_v22 }
 0x9cc   :  { %v637_v26 = vsel %vm636_vm4, %v788_v18, %v633_v24 }
 0x9cd   :  { %v642_v27 = vsel %vm639_vm5, %v641_v25, %v637_v26 }
 0x9ce   :  { %645 = vst.msk [vmem:[%s1042_s8] sm:$0x3] %vm644_vm15, %v642_v27 }
 0x9cf   :  { %650 = vsyncpa [#allocation4], 1 }
 0x9d0   :  { %651 = vsyncpa [#allocation6], 1 }

</bundles_post_ra>
